<compile_context>
chip_gen: v5e
topology: v5e:2x2
jax: 0.10.0
libtpu: 0.0.40
codegen_flags: <defaults>
</compile_context>

<pallas_src>
import functools

import jax
import jax.numpy as jnp
from jax.experimental import pallas as pl
from jax.experimental.pallas import tpu as pltpu


# Max tile targets (f32-class); lane dims multiples of 128 (MXU friendly on
# v5e/v6e/v7x).  Worst-case double-buffered footprint is computed per call and
# passed as vmem_limit_bytes.
_TM, _TN, _TK = 512, 512, 1024


def _round_up(x, m):
    return ((x + m - 1) // m) * m


def _sublane(dtype):
    # Minimum sublane multiple by element width (f32:8, bf16:16, int8/fp8:32).
    return {4: 8, 2: 16, 1: 32}.get(jnp.dtype(dtype).itemsize, 8)


def _pick_tile(n, unit, cap):
    """Largest tile <= cap (multiple of `unit`) minimizing padding waste."""
    nb = _round_up(n, unit)
    if nb <= cap:
        return nb
    best_t, best_w = cap, _round_up(nb, cap) - nb
    t = cap - unit
    while t >= unit and best_w > 0:
        w = _round_up(nb, t) - nb
        if w < best_w:
            best_t, best_w = t, w
        t -= unit
    return best_t


def _derive_nk_tiles(d_in, d_out):
    tn = _pick_tile(d_out, 128, _TN)
    tk = _pick_tile(d_in, 128, _TK)
    Np = _round_up(_round_up(d_out, 128), tn)
    Kp = _round_up(_round_up(d_in, 128), tk)
    return tn, tk, Np, Kp


# ----------------------------------------------------------------------------
# Kernels
# ----------------------------------------------------------------------------
def _dense_kernel_single(x_ref, wt_ref, b_ref, o_ref):
    # Single K pass: fused matmul + bias epilogue.  No scratch, no pl.when.
    o_ref[...] = (
        jnp.dot(x_ref[...], wt_ref[...], preferred_element_type=jnp.float32)
        + b_ref[...].astype(jnp.float32)
    ).astype(o_ref.dtype)


def _dense_kernel_multik_f32(x_ref, wt_ref, b_ref, o_ref):
    # f32 output: accumulate directly into the resident output block (its
    # block index is independent of k), no acc scratch, no finalize copy.
    k = pl.program_id(2)

    @pl.when(k == 0)
    def _init():
        o_ref[...] = jnp.zeros_like(o_ref)

    o_ref[...] += jnp.dot(
        x_ref[...], wt_ref[...], preferred_element_type=jnp.float32
    )

    @pl.when(k == pl.num_programs(2) - 1)
    def _finalize():
        o_ref[...] += b_ref[...]


def _dense_kernel_multik_acc(x_ref, wt_ref, b_ref, o_ref, acc_ref):
    # Non-f32 output: f32 accumulator scratch, cast on the last K step.
    k = pl.program_id(2)

    @pl.when(k == 0)
    def _init():
        acc_ref[...] = jnp.zeros_like(acc_ref)

    acc_ref[...] += jnp.dot(
        x_ref[...], wt_ref[...], preferred_element_type=jnp.float32
    )

    @pl.when(k == pl.num_programs(2) - 1)
    def _finalize():
        o_ref[...] = (acc_ref[...] + b_ref[...]).astype(o_ref.dtype)


# ----------------------------------------------------------------------------
# Parameter pre-formatting (do ONCE at parameter-load time)
# ----------------------------------------------------------------------------
def prepare_dense_params(weight, bias, *, compute_dtype=None):
    """Transpose + pad (+ optional bf16 cast) the Linear params once.

    Returns (wtp, bp): weight as (Kp, Np) lane-dense, bias as f32 (1, Np).
    """
    d_out, d_in = weight.shape
    tn, tk, Np, Kp = _derive_nk_tiles(d_in, d_out)
    del tn, tk
    wt = weight.T
    if compute_dtype is not None:
        wt = wt.astype(jnp.dtype(compute_dtype))
    if (Kp, Np) != (d_in, d_out):
        wt = jnp.pad(wt, ((0, Kp - d_in), (0, Np - d_out)))
    bp = jnp.pad(bias.astype(jnp.float32), (0, Np - d_out)).reshape(1, Np)
    return wt, bp


# ----------------------------------------------------------------------------
# Forward on pre-formatted params (jitted)
# ----------------------------------------------------------------------------
@functools.partial(jax.jit, static_argnames=("d_out", "compute_dtype"))
def dense_forward_preformatted(x, wtp, bp, *, d_out, compute_dtype=None):
    B, d_in = x.shape
    out_dtype = x.dtype
    cdt = jnp.dtype(compute_dtype) if compute_dtype is not None else x.dtype

    tn, tk, Np, Kp = _derive_nk_tiles(d_in, d_out)
    assert wtp.shape == (Kp, Np), (wtp.shape, (Kp, Np))
    assert bp.shape == (1, Np)
    n_blocks = Np // tn
    k_blocks = Kp // tk

    # M tiling: dtype-aware sublane rounding, minimal padding, and a 2-way
    # split so both v7x TensorCores get work when the grid would be (1,1,...).
    sub = _sublane(cdt)
    bm = _round_up(B, sub)
    tm = _pick_tile(B, sub, _TM)
    Mp = _round_up(bm, tm)
    if Mp // tm == 1 and n_blocks == 1 and bm >= 256:
        tm = _round_up(-(-bm // 2), sub)
        Mp = _round_up(bm, tm)
    m_blocks = Mp // tm

    # Cast / pad the activations only when needed.
    xk = x if cdt == x.dtype else x.astype(cdt)
    if (Mp, Kp) != (B, d_in):
        xk = jnp.pad(xk, ((0, Mp - B), (0, Kp - d_in)))

    if k_blocks == 1:
        # K collapsed: single dot with fused bias epilogue.
        block_k = Kp
        grid = (m_blocks, n_blocks)
        kernel = _dense_kernel_single
        in_specs = [
            pl.BlockSpec((tm, Kp), lambda i, j: (i, 0)),
            pl.BlockSpec((Kp, tn), lambda i, j: (0, j)),
            pl.BlockSpec((1, tn), lambda i, j: (0, j)),
        ]
        out_specs = pl.BlockSpec((tm, tn), lambda i, j: (i, j))
        out_kernel_dtype = out_dtype
        scratch = []
        dims = ("parallel", "parallel")
    else:
        block_k = tk
        grid = (m_blocks, n_blocks, k_blocks)
        in_specs = [
            pl.BlockSpec((tm, tk), lambda i, j, k: (i, k)),
            pl.BlockSpec((tk, tn), lambda i, j, k: (k, j)),
            pl.BlockSpec((1, tn), lambda i, j, k: (0, j)),
        ]
        out_specs = pl.BlockSpec((tm, tn), lambda i, j, k: (i, j))
        dims = ("parallel", "parallel", "arbitrary")
        if out_dtype == jnp.float32:
            kernel = _dense_kernel_multik_f32
            out_kernel_dtype = jnp.float32
            scratch = []
        else:
            kernel = _dense_kernel_multik_acc
            out_kernel_dtype = out_dtype
            scratch = [pltpu.VMEM((tm, tn), jnp.float32)]

    # Explicit scoped-VMEM budget from the actual double-buffered footprint
    # (covers v5e's 16 MiB default; capped well under v7x's 64 MiB/TC).
    in_item = cdt.itemsize
    out_item = jnp.dtype(out_kernel_dtype).itemsize
    est = (
        2 * (tm * block_k + block_k * tn) * in_item
        + 2 * tn * 4
        + 2 * tm * tn * out_item
        + (tm * tn * 4 if scratch else 0)
    )
    vmem_limit = int(min(48 << 20, max(24 << 20, 2 * est)))

    yp = pl.pallas_call(
        kernel,
        out_shape=jax.ShapeDtypeStruct((Mp, Np), out_kernel_dtype),
        grid_spec=pltpu.PrefetchScalarGridSpec(
            num_scalar_prefetch=0,
            grid=grid,
            in_specs=in_specs,
            out_specs=out_specs,
            scratch_shapes=scratch,
        ),
        compiler_params=pltpu.CompilerParams(
            dimension_semantics=dims,
            vmem_limit_bytes=vmem_limit,
        ),
    )(xk, wtp, bp)

    y = yp
    if (Mp, Np) != (B, d_out):
        y = y[:B, :d_out]
    if y.dtype != out_dtype:
        y = y.astype(out_dtype)
    # [..., None] -> reshape outputs to feature maps (B, d_out, 1)
    return y[..., None]


# ----------------------------------------------------------------------------
# Convenience wrapper (formats params on the fly; prefer pre-formatting)
# ----------------------------------------------------------------------------
def dense_forward(x, weight, bias, *, compute_dtype=None, force_pallas=True):
    """Pallas equivalent of Dense.forward: nn.Linear(x)[..., None]."""
    d_out = weight.shape[0]
    if not force_pallas and x.shape[0] * x.shape[1] * d_out < (1 << 18):
        # Tiny problem: launch/DMA overhead dominates; let fused XLA handle it.
        return (x @ weight.T + bias)[..., None]
    cd = None if compute_dtype is None else jnp.dtype(compute_dtype).name
    wtp, bp = prepare_dense_params(weight, bias, compute_dtype=cd)
    return dense_forward_preformatted(x, wtp, bp, d_out=d_out, compute_dtype=cd)


if __name__ == "__main__":
    key = jax.random.PRNGKey(0)
    keys = jax.random.split(key, 9)

    # ---- 1. Small shapes matching the module's toy usage --------------------
    batch, input_dim, output_dim = 8, 32, 16
    bound = 1.0 / (input_dim ** 0.5)
    x = jax.random.normal(keys[0], (batch, input_dim), dtype=jnp.float32)
    weight = jax.random.uniform(
        keys[1], (output_dim, input_dim), minval=-bound, maxval=bound,
        dtype=jnp.float32)
    bias = jax.random.uniform(
        keys[2], (output_dim,), minval=-bound, maxval=bound, dtype=jnp.float32)

    # Pre-format the params once ("parameter-load time"), reuse across calls.
    wtp, bp = prepare_dense_params(weight, bias)
    out = jax.block_until_ready(
        dense_forward_preformatted(x, wtp, bp, d_out=output_dim))
    ref = (x @ weight.T + bias)[..., None]
    assert out.shape == (batch, output_dim, 1), out.shape
    assert jnp.allclose(out, ref, atol=1e-5, rtol=1e-5), "mismatch (small)"

    # ---- 2. Single-K-pass path with non-trivial dims -------------------------
    b2, di2, do2 = 48, 640, 192
    bound2 = 1.0 / (di2 ** 0.5)
    x2 = jax.random.normal(keys[3], (b2, di2), dtype=jnp.float32)
    w2 = jax.random.uniform(keys[4], (do2, di2), minval=-bound2, maxval=bound2,
                            dtype=jnp.float32)
    bv2 = jax.random.uniform(keys[5], (do2,), minval=-bound2, maxval=bound2,
                             dtype=jnp.float32)
    out2 = jax.block_until_ready(dense_forward(x2, w2, bv2))
    ref2 = (jnp.dot(x2, w2.T, precision=jax.lax.Precision.HIGHEST) + bv2)[..., None]
    assert out2.shape == (b2, do2, 1), out2.shape
    assert jnp.allclose(out2, ref2, atol=1e-3, rtol=1e-3), "mismatch (single-K)"

    # ---- 3. Multi-K accumulation + megacore M split --------------------------
    b3, di3, do3 = 384, 1536, 256
    bound3 = 1.0 / (di3 ** 0.5)
    x3 = jax.random.normal(keys[6], (b3, di3), dtype=jnp.float32)
    w3 = jax.random.uniform(keys[7], (do3, di3), minval=-bound3, maxval=bound3,
                            dtype=jnp.float32)
    bv3 = jax.random.uniform(keys[8], (do3,), minval=-bound3, maxval=bound3,
                             dtype=jnp.float32)
    out3 = jax.block_until_ready(dense_forward(x3, w3, bv3))
    ref3 = (jnp.dot(x3, w3.T, precision=jax.lax.Precision.HIGHEST) + bv3)[..., None]
    assert out3.shape == (b3, do3, 1), out3.shape
    assert jnp.allclose(out3, ref3, atol=1e-2, rtol=1e-2), "mismatch (multi-K)"

    # ---- 4. Optional bf16-operand path (f32 accumulate + f32 bias epilogue) --
    out4 = jax.block_until_ready(
        dense_forward(x2, w2, bv2, compute_dtype="bfloat16"))
    assert out4.shape == (b2, do2, 1), out4.shape
    assert jnp.allclose(out4, ref2, atol=5e-2, rtol=5e-2), "mismatch (bf16)"

    print("KERNEL_OK")
</pallas_src>

<mosaic_0001>
module attributes {stable_mosaic.version = 11 : i64} {
  func.func @_dense_kernel_single(%arg0: i32, %arg1: i32, %arg2: memref<8x128xf32, #tpu.memory_space<vmem>>, %arg3: memref<128x128xf32, #tpu.memory_space<vmem>>, %arg4: memref<1x128xf32, #tpu.memory_space<vmem>>, %arg5: memref<8x128xf32, #tpu.memory_space<vmem>>) attributes {dimension_semantics = [#tpu.dimension_semantics<parallel>, #tpu.dimension_semantics<parallel>], iteration_bounds = array<i64: 1, 1>, scalar_prefetch = 0 : i64, scratch_operands = 0 : i64, tpu.core_type = #tpu.core_type<tc>, window_params = [{transform_indices = @transform_0, window_bounds = array<i64: 8, 128>}, {transform_indices = @transform_1, window_bounds = array<i64: 128, 128>}, {transform_indices = @transform_2, window_bounds = array<i64: 1, 128>}, {transform_indices = @transform_3, window_bounds = array<i64: 8, 128>}]} {
    %c0 = arith.constant 0 : index
    %c0_0 = arith.constant 0 : index
    %0 = vector.load %arg2[%c0, %c0_0] : memref<8x128xf32, #tpu.memory_space<vmem>>, vector<8x128xf32>
    %c0_1 = arith.constant 0 : index
    %c0_2 = arith.constant 0 : index
    %1 = vector.load %arg3[%c0_1, %c0_2] : memref<128x128xf32, #tpu.memory_space<vmem>>, vector<128x128xf32>
    %cst = arith.constant dense<0.000000e+00> : vector<8x128xf32>
    %2 = tpu.matmul %0, %1, %cst {dimension_numbers = #tpu.dot_dimension_numbers<[1], [0], [0], [1], [0, 0, 1, 1], [], []>} : vector<8x128xf32>, vector<128x128xf32>, vector<8x128xf32> -> vector<8x128xf32>
    %c0_3 = arith.constant 0 : index
    %c0_4 = arith.constant 0 : index
    %3 = vector.load %arg4[%c0_3, %c0_4] : memref<1x128xf32, #tpu.memory_space<vmem>>, vector<1x128xf32>
    %4 = vector.broadcast %3 : vector<1x128xf32> to vector<8x128xf32>
    %5 = arith.addf %2, %4 : vector<8x128xf32>
    %c0_5 = arith.constant 0 : index
    %c0_6 = arith.constant 0 : index
    %6 = vector.load %arg5[%c0_5, %c0_6] : memref<8x128xf32, #tpu.memory_space<vmem>>, vector<8x128xf32>
    tpu.vector_store %arg5[%c0_5, %c0_6], %5 {strides = array<i32>} : memref<8x128xf32, #tpu.memory_space<vmem>>, vector<8x128xf32>,
    return
  }
  func.func @transform_0(%arg0: i32, %arg1: i32) -> (i32, i32) {
    %c0_i32 = arith.constant 0 : i32
    %c0_i32_0 = arith.constant 0 : i32
    return %arg0, %c0_i32 : i32, i32
  }
  func.func @transform_1(%arg0: i32, %arg1: i32) -> (i32, i32) {
    %c0_i32 = arith.constant 0 : i32
    %c0_i32_0 = arith.constant 0 : i32
    return %c0_i32, %arg1 : i32, i32
  }
  func.func @transform_2(%arg0: i32, %arg1: i32) -> (i32, i32) {
    %c0_i32 = arith.constant 0 : i32
    %c0_i32_0 = arith.constant 0 : i32
    return %c0_i32, %arg1 : i32, i32
  }
  func.func @transform_3(%arg0: i32, %arg1: i32) -> (i32, i32) {
    %c0_i32 = arith.constant 0 : i32
    return %arg0, %arg1 : i32, i32
  }
}

</mosaic_0001>

<bundles_post_ra>
// kernel: dense_forward_preformatted.1
= control target key start
LH: loop header
LB: loop body
LE: loop exit
PB: predicated region body
PF: predicated region fallthrough
CT: control target
= control target key end

     0   :  { %8 = vsyncpa [#allocation3], 0  ;;  %s183_s0 = inlined_call_operand.vmem [shape: f32[8,128], index: 0, kind: input, shape index: {}]   ;;  %s184_s1 = inlined_call_operand.hbm [shape: f32[128,128], index: 1, kind: input, shape index: {}]   ;;  %s185_s2 = inlined_call_operand.vmem [shape: f32[1,128], index: 2, kind: input, shape index: {}]   ;;  %s186_s3 = inlined_call_operand.hbm [shape: f32[8,128], index: 3, kind: output, shape index: {}]  }
   0x1   :  { %9 = vsyncpa [#allocation4], 0  ;;  %s16_s14 = sshll.u32 %s184_s1, 4  ;;  %s147_s15 = smov [#allocation2]   ;;  %s17_s14 = int_to_ptr.hbm [resolvable:$true] %s16_s14 }
   0x2   :  { %s18_s16 = sshll.u32 %s147_s15, 4  ;;  %s148_s17 = smov 128   ;;  %s19_s16 = int_to_ptr.vmem [resolvable:$true] %s18_s16 }
   0x3   :  { %s149_s18 = smov 8  }
   0x4   :  { %24 = dma.hbm_to_vmem [thread:$0]  %s17_s14, 2048, %s19_s16, [#allocation3], %s148_s17, %s148_s17, %s149_s18  }
   0x5   :  { %143 = dma.done.wait [#allocation3], 2048  }
   0x6   :  { %144 = vsyncadd [#allocation3], 4294965248  ;;  %v47_v0 = vld [vmem:[#allocation2 + $0x78] sm:$0xff]  ;;  %v46_v1 = vld [vmem:[#allocation2 + $0x70] sm:$0xff]  ;;  %s150_s22 = smov [#allocation5]   ;;  %s80_s26 = sshll.u32 %s186_s3, 4  ;;  %s81_s26 = int_to_ptr.hbm [resolvable:$true] %s80_s26 }
   0x7   :  { %52 = vmatpush.msra.mxu0 %v47_v0  ;;  %v45_v2 = vld [vmem:[#allocation2 + $0x68] sm:$0xff]  ;;  %v44_v3 = vld [vmem:[#allocation2 + $0x60] sm:$0xff]  ;;  %v43_v4 = vld [vmem:[#allocation2 + $0x58] sm:$0xff]  ;;  %s78_s23 = sshll.u32 %s150_s22, 4  ;;  %s79_s23 = int_to_ptr.vmem [resolvable:$true] %s78_s23 }
   0x8   :  { %v42_v5 = vld [vmem:[#allocation2 + $0x50] sm:$0xff]  ;;  %v41_v6 = vld [vmem:[#allocation2 + $0x48] sm:$0xff]  ;;  %v40_v7 = vld [vmem:[#allocation2 + $0x40] sm:$0xff] }
   0x9   :  { %53 = vmatpush.msra.mxu0 %v46_v1  ;;  %v39_v8 = vld [vmem:[#allocation2 + $0x38] sm:$0xff]  ;;  %v38_v9 = vld [vmem:[#allocation2 + $0x30] sm:$0xff]  ;;  %v37_v10 = vld [vmem:[#allocation2 + $0x28] sm:$0xff] }
   0xa   :  { %v36_v11 = vld [vmem:[#allocation2 + $0x20] sm:$0xff]  ;;  %v35_v12 = vld [vmem:[#allocation2 + $0x18] sm:$0xff]  ;;  %v34_v13 = vld [vmem:[#allocation2 + $0x10] sm:$0xff] }
   0xb   :  { %54 = vmatpush.msra.mxu0 %v45_v2  ;;  %v33_v14 = vld [vmem:[#allocation2 + $0x8] sm:$0xff]  ;;  %v32_v15 = vld [vmem:[#allocation2] sm:$0xff] }
   0xc   :  { %v31_v16 = vld [vmem:[%s183_s0] sm:$0xff] }
   0xd   :  { %55 = vmatpush.msra.mxu0 %v44_v3  ;;  %v94_v17 = vld [vmem:[%s185_s2] ss:$0 sm:$0xff] }
   0xf   :  { %56 = vmatpush.msra.mxu0 %v43_v4 }
  0x11   :  { %57 = vmatpush.msra.mxu0 %v42_v5 }
  0x13   :  { %58 = vmatpush.msra.mxu0 %v41_v6 }
  0x15   :  { %59 = vmatpush.msra.mxu0 %v40_v7 }
  0x17   :  { %60 = vmatpush.msra.mxu0 %v39_v8 }
  0x19   :  { %61 = vmatpush.msra.mxu0 %v38_v9 }
  0x1b   :  { %62 = vmatpush.msra.mxu0 %v37_v10 }
  0x1d   :  { %63 = vmatpush.msra.mxu0 %v36_v11 }
  0x1f   :  { %64 = vmatpush.msra.mxu0 %v35_v12 }
  0x21   :  { %65 = vmatpush.msra.mxu0 %v34_v13 }
  0x23   :  { %66 = vmatpush.msra.mxu0 %v33_v14 }
  0x25   :  { %67 = vmatpush.msra.mxu0 %v32_v15 }
  0x26   :  { %68 = vmatmul.f32.vlgmr.msra.gmra.mxu0 %v31_v16 }
  0xa3   :  { %v69_v18 = vpop.f32.mrf.mxu0 }
  0xa4   :  { %v70_v19 = vadd.f32 %v94_v17, %v69_v18 }
  0xa6   :  { %72 = vst [vmem:[#allocation5] sm:$0xff] %v70_v19 }
  0xa7   :  { %83 = dma.vmem_to_hbm [thread:$0]  %s79_s23, 128, %s81_s26, [#allocation4]  }
  0xa8   :  { %145 = dma.done.wait [#allocation4], 128  }
  0xa9   :  { %146 = vsyncadd [#allocation4], 4294967168 }
  0xaa   :  { %88 = vsyncpa [#allocation3], 1 }
  0xab   :  { %89 = vsyncpa [#allocation4], 1 }

</bundles_post_ra>
